<compile_context>
chip_gen: v6e
topology: v6e:2x2x1
jax: 0.10.0
libtpu: 0.0.40
codegen_flags: <defaults>
</compile_context>

<pallas_src>
import functools
import math

import jax
import jax.numpy as jnp
from jax.experimental import pallas as pl
from jax.experimental.pallas import tpu as pltpu

BP = 8          # padded batch (sublane multiple)
HH = 64         # lane slot per direction (fwd lanes 0:64, bwd lanes 64:128)
LANES = 2 * HH  # 128: packed hidden / packed input width
OP = 128        # padded output dim


def _rnn_kernel(x_ref, wih_ref, whh_ref, b_ref, wfc_ref, bfc_ref, out_ref,
                *, seq_len, batch_pad):
    """Whole forward pass in one invocation; all operands resident in VMEM."""
    # Hoisted input projection for all timesteps and both directions, bias
    # folded in once (removes T small matmuls + bias broadcasts from the chain).
    xw = jnp.dot(x_ref[...], wih_ref[...],
                 preferred_element_type=jnp.float32) + b_ref[...]   # (T*BP, 128) f32

    whh = whh_ref[...]                                              # (128, 128) bf16
    h = jnp.zeros((batch_pad, LANES), jnp.float32)

    # Fully-unrolled fused recurrence: fwd direction in lanes 0:64 reads x[t],
    # bwd direction in lanes 64:128 reads x[T-1-t]; whh is block-diagonal, so
    # one (8,128)@(128,128) bf16 matmul per step covers both directions.
    for t in range(seq_len):
        xt = xw[t * batch_pad:(t + 1) * batch_pad]                  # static 1-vreg slice
        h = jnp.tanh(xt + jnp.dot(h.astype(jnp.bfloat16), whh,
                                  preferred_element_type=jnp.float32))

    # Dropout is identity at inference.  concat(h_f, h_b) @ W_fc^T is realized
    # as packed_h @ wfc_pack (per-direction halves stacked along rows).
    logits = jnp.dot(h.astype(jnp.bfloat16), wfc_ref[...],
                     preferred_element_type=jnp.float32) + bfc_ref[...]
    out_ref[...] = jax.nn.sigmoid(logits)


def init_params(key, input_dim, hidden_dim, output_dim, bidirectional):
    """Deterministic parameter init matching PyTorch nn.RNN / nn.Linear shapes."""
    n = 10 if bidirectional else 6
    ks = jax.random.split(key, n)
    k_rnn = 1.0 / math.sqrt(hidden_dim)
    factor = 2 if bidirectional else 1
    k_fc = 1.0 / math.sqrt(factor * hidden_dim)
    u = lambda k, shape, bound: jax.random.uniform(
        k, shape, jnp.float32, minval=-bound, maxval=bound)
    p = dict(
        w_ih_f=u(ks[0], (hidden_dim, input_dim), k_rnn),
        w_hh_f=u(ks[1], (hidden_dim, hidden_dim), k_rnn),
        b_ih_f=u(ks[2], (hidden_dim,), k_rnn),
        b_hh_f=u(ks[3], (hidden_dim,), k_rnn),
        w_fc=u(ks[4], (output_dim, factor * hidden_dim), k_fc),
        b_fc=u(ks[5], (output_dim,), k_fc),
    )
    if bidirectional:
        p.update(
            w_ih_b=u(ks[6], (hidden_dim, input_dim), k_rnn),
            w_hh_b=u(ks[7], (hidden_dim, hidden_dim), k_rnn),
            b_ih_b=u(ks[8], (hidden_dim,), k_rnn),
            b_hh_b=u(ks[9], (hidden_dim,), k_rnn),
        )
    return p


def simple_rnn_forward(x, params, hidden_dim, output_dim, bidirectional):
    """x: (B, T, D) float32 -> (B, output_dim) float32."""
    B, T, D = x.shape
    H, O = hidden_dim, output_dim
    assert B <= BP and D <= HH and H <= HH and O <= OP, "toy-size packing limits"

    x_tm = jnp.transpose(x, (1, 0, 2)).astype(jnp.float32)           # (T, B, D)

    # Packed input: lanes 0:D = x[t], lanes 64:64+D = x[T-1-t] (bwd direction).
    xp = jnp.zeros((T, BP, LANES), jnp.float32)
    xp = xp.at[:, :B, :D].set(x_tm)
    if bidirectional:
        xp = xp.at[:, :B, HH:HH + D].set(x_tm[::-1])
    x_pack = xp.reshape(T * BP, LANES).astype(jnp.bfloat16)

    # Block-structured, pre-transposed weights (x_t @ W^T -> x_t @ w_pack).
    wih = jnp.zeros((LANES, LANES), jnp.float32)
    wih = wih.at[:D, :H].set(params["w_ih_f"].T)
    whh = jnp.zeros((LANES, LANES), jnp.float32)
    whh = whh.at[:H, :H].set(params["w_hh_f"].T)
    b = jnp.zeros((1, LANES), jnp.float32)
    b = b.at[0, :H].set(params["b_ih_f"] + params["b_hh_f"])
    wfc = jnp.zeros((LANES, OP), jnp.float32)
    wfc = wfc.at[:H, :O].set(params["w_fc"][:, :H].T)
    if bidirectional:
        wih = wih.at[HH:HH + D, HH:HH + H].set(params["w_ih_b"].T)
        whh = whh.at[HH:HH + H, HH:HH + H].set(params["w_hh_b"].T)
        b = b.at[0, HH:HH + H].set(params["b_ih_b"] + params["b_hh_b"])
        wfc = wfc.at[HH:HH + H, :O].set(params["w_fc"][:, H:].T)
    bfc = jnp.zeros((1, OP), jnp.float32).at[0, :O].set(params["b_fc"])

    vmem = pl.BlockSpec(memory_space=pltpu.MemorySpace.VMEM)
    kernel = functools.partial(_rnn_kernel, seq_len=T, batch_pad=BP)
    out_p = pl.pallas_call(
        kernel,
        out_shape=jax.ShapeDtypeStruct((BP, OP), jnp.float32),
        in_specs=[vmem] * 6,
        out_specs=vmem,
    )(x_pack,
      wih.astype(jnp.bfloat16),
      whh.astype(jnp.bfloat16),
      b,
      wfc.astype(jnp.bfloat16),
      bfc)

    return out_p[:B, :O]


def reference_forward(x, params, hidden_dim, output_dim, bidirectional):
    """Pure-JAX f32 reference of the PyTorch forward (eval mode)."""
    B, T, D = x.shape
    H = hidden_dim

    def run(w_ih, w_hh, b_ih, b_hh, reverse):
        h = jnp.zeros((B, H), jnp.float32)
        ts = range(T - 1, -1, -1) if reverse else range(T)
        for t in ts:
            h = jnp.tanh(x[:, t, :] @ w_ih.T + b_ih + h @ w_hh.T + b_hh)
        return h

    h_f = run(params["w_ih_f"], params["w_hh_f"],
              params["b_ih_f"], params["b_hh_f"], reverse=False)
    if bidirectional:
        h_b = run(params["w_ih_b"], params["w_hh_b"],
                  params["b_ih_b"], params["b_hh_b"], reverse=True)
        h = jnp.concatenate([h_f, h_b], axis=1)
    else:
        h = h_f
    # TODO(synk): dropout_layer is applied in the PyTorch forward but is
    # identity in eval mode; inference semantics (identity) are used here.
    logits = h @ params["w_fc"].T + params["b_fc"]
    return jax.nn.sigmoid(logits)


if __name__ == "__main__":
    B, T, D = 2, 8, 4          # batch, seq_len, input_dim
    H, O = 5, 1                # SimpleRNN defaults: hidden_dim=5, output_dim=1

    key = jax.random.PRNGKey(0)
    k_param, k_x = jax.random.split(key)
    x = jax.random.normal(k_x, (B, T, D), jnp.float32)

    for bidir in (False, True):    # module default (False) and bidirectional variant
        params = init_params(k_param, D, H, O, bidir)
        out = simple_rnn_forward(x, params, H, O, bidirectional=bidir)
        out = jax.block_until_ready(out)
        ref = reference_forward(x, params, H, O, bidirectional=bidir)
        assert out.shape == (B, O)
        # bf16 MXU operands -> loosened tolerance vs. the f32 reference.
        assert jnp.allclose(out, ref, atol=2e-2, rtol=2e-2), (bidir, out, ref)

    print("KERNEL_OK")
</pallas_src>

<mosaic_0001>
module attributes {stable_mosaic.version = 11 : i64} {
  func.func @_rnn_kernel(%arg0: memref<64x128xbf16, #tpu.memory_space<vmem>>, %arg1: memref<128x128xbf16, #tpu.memory_space<vmem>>, %arg2: memref<128x128xbf16, #tpu.memory_space<vmem>>, %arg3: memref<1x128xf32, #tpu.memory_space<vmem>>, %arg4: memref<128x128xbf16, #tpu.memory_space<vmem>>, %arg5: memref<1x128xf32, #tpu.memory_space<vmem>>, %arg6: memref<8x128xf32, #tpu.memory_space<vmem>>) attributes {dimension_semantics = [], scalar_prefetch = 0 : i64, scratch_operands = 0 : i64, tpu.core_type = #tpu.core_type<tc>} {
    %c0 = arith.constant 0 : index
    %c0_0 = arith.constant 0 : index
    %0 = vector.load %arg0[%c0, %c0_0] : memref<64x128xbf16, #tpu.memory_space<vmem>>, vector<64x128xbf16>
    %c0_1 = arith.constant 0 : index
    %c0_2 = arith.constant 0 : index
    %1 = vector.load %arg1[%c0_1, %c0_2] : memref<128x128xbf16, #tpu.memory_space<vmem>>, vector<128x128xbf16>
    %cst = arith.constant dense<0.000000e+00> : vector<64x128xf32>
    %2 = tpu.matmul %0, %1, %cst {dimension_numbers = #tpu.dot_dimension_numbers<[1], [0], [0], [1], [0, 0, 1, 1], [], []>} : vector<64x128xbf16>, vector<128x128xbf16>, vector<64x128xf32> -> vector<64x128xf32>
    %c0_3 = arith.constant 0 : index
    %c0_4 = arith.constant 0 : index
    %3 = vector.load %arg3[%c0_3, %c0_4] : memref<1x128xf32, #tpu.memory_space<vmem>>, vector<1x128xf32>
    %4 = vector.broadcast %3 : vector<1x128xf32> to vector<64x128xf32>
    %5 = arith.addf %2, %4 : vector<64x128xf32>
    %c0_5 = arith.constant 0 : index
    %c0_6 = arith.constant 0 : index
    %6 = vector.load %arg2[%c0_5, %c0_6] : memref<128x128xbf16, #tpu.memory_space<vmem>>, vector<128x128xbf16>
    %cst_7 = arith.constant 0.000000e+00 : f32
    %7 = vector.broadcast %cst_7 : f32 to vector<8x128xf32>
    %8 = vector.extract_strided_slice %5 {offsets = [0, 0], sizes = [8, 128], strides = [1, 1]} : vector<64x128xf32> to vector<8x128xf32>
    %9 = arith.truncf %7 : vector<8x128xf32> to vector<8x128xbf16>
    %cst_8 = arith.constant dense<0.000000e+00> : vector<8x128xf32>
    %10 = tpu.matmul %9, %6, %cst_8 {dimension_numbers = #tpu.dot_dimension_numbers<[1], [0], [0], [1], [0, 0, 1, 1], [], []>} : vector<8x128xbf16>, vector<128x128xbf16>, vector<8x128xf32> -> vector<8x128xf32>
    %11 = arith.addf %8, %10 : vector<8x128xf32>
    %12 = math.tanh %11 : vector<8x128xf32>
    %13 = vector.extract_strided_slice %5 {offsets = [8, 0], sizes = [8, 128], strides = [1, 1]} : vector<64x128xf32> to vector<8x128xf32>
    %14 = arith.truncf %12 : vector<8x128xf32> to vector<8x128xbf16>
    %cst_9 = arith.constant dense<0.000000e+00> : vector<8x128xf32>
    %15 = tpu.matmul %14, %6, %cst_9 {dimension_numbers = #tpu.dot_dimension_numbers<[1], [0], [0], [1], [0, 0, 1, 1], [], []>} : vector<8x128xbf16>, vector<128x128xbf16>, vector<8x128xf32> -> vector<8x128xf32>
    %16 = arith.addf %13, %15 : vector<8x128xf32>
    %17 = math.tanh %16 : vector<8x128xf32>
    %18 = vector.extract_strided_slice %5 {offsets = [16, 0], sizes = [8, 128], strides = [1, 1]} : vector<64x128xf32> to vector<8x128xf32>
    %19 = arith.truncf %17 : vector<8x128xf32> to vector<8x128xbf16>
    %cst_10 = arith.constant dense<0.000000e+00> : vector<8x128xf32>
    %20 = tpu.matmul %19, %6, %cst_10 {dimension_numbers = #tpu.dot_dimension_numbers<[1], [0], [0], [1], [0, 0, 1, 1], [], []>} : vector<8x128xbf16>, vector<128x128xbf16>, vector<8x128xf32> -> vector<8x128xf32>
    %21 = arith.addf %18, %20 : vector<8x128xf32>
    %22 = math.tanh %21 : vector<8x128xf32>
    %23 = vector.extract_strided_slice %5 {offsets = [24, 0], sizes = [8, 128], strides = [1, 1]} : vector<64x128xf32> to vector<8x128xf32>
    %24 = arith.truncf %22 : vector<8x128xf32> to vector<8x128xbf16>
    %cst_11 = arith.constant dense<0.000000e+00> : vector<8x128xf32>
    %25 = tpu.matmul %24, %6, %cst_11 {dimension_numbers = #tpu.dot_dimension_numbers<[1], [0], [0], [1], [0, 0, 1, 1], [], []>} : vector<8x128xbf16>, vector<128x128xbf16>, vector<8x128xf32> -> vector<8x128xf32>
    %26 = arith.addf %23, %25 : vector<8x128xf32>
    %27 = math.tanh %26 : vector<8x128xf32>
    %28 = vector.extract_strided_slice %5 {offsets = [32, 0], sizes = [8, 128], strides = [1, 1]} : vector<64x128xf32> to vector<8x128xf32>
    %29 = arith.truncf %27 : vector<8x128xf32> to vector<8x128xbf16>
    %cst_12 = arith.constant dense<0.000000e+00> : vector<8x128xf32>
    %30 = tpu.matmul %29, %6, %cst_12 {dimension_numbers = #tpu.dot_dimension_numbers<[1], [0], [0], [1], [0, 0, 1, 1], [], []>} : vector<8x128xbf16>, vector<128x128xbf16>, vector<8x128xf32> -> vector<8x128xf32>
    %31 = arith.addf %28, %30 : vector<8x128xf32>
    %32 = math.tanh %31 : vector<8x128xf32>
    %33 = vector.extract_strided_slice %5 {offsets = [40, 0], sizes = [8, 128], strides = [1, 1]} : vector<64x128xf32> to vector<8x128xf32>
    %34 = arith.truncf %32 : vector<8x128xf32> to vector<8x128xbf16>
    %cst_13 = arith.constant dense<0.000000e+00> : vector<8x128xf32>
    %35 = tpu.matmul %34, %6, %cst_13 {dimension_numbers = #tpu.dot_dimension_numbers<[1], [0], [0], [1], [0, 0, 1, 1], [], []>} : vector<8x128xbf16>, vector<128x128xbf16>, vector<8x128xf32> -> vector<8x128xf32>
    %36 = arith.addf %33, %35 : vector<8x128xf32>
    %37 = math.tanh %36 : vector<8x128xf32>
    %38 = vector.extract_strided_slice %5 {offsets = [48, 0], sizes = [8, 128], strides = [1, 1]} : vector<64x128xf32> to vector<8x128xf32>
    %39 = arith.truncf %37 : vector<8x128xf32> to vector<8x128xbf16>
    %cst_14 = arith.constant dense<0.000000e+00> : vector<8x128xf32>
    %40 = tpu.matmul %39, %6, %cst_14 {dimension_numbers = #tpu.dot_dimension_numbers<[1], [0], [0], [1], [0, 0, 1, 1], [], []>} : vector<8x128xbf16>, vector<128x128xbf16>, vector<8x128xf32> -> vector<8x128xf32>
    %41 = arith.addf %38, %40 : vector<8x128xf32>
    %42 = math.tanh %41 : vector<8x128xf32>
    %43 = vector.extract_strided_slice %5 {offsets = [56, 0], sizes = [8, 128], strides = [1, 1]} : vector<64x128xf32> to vector<8x128xf32>
    %44 = arith.truncf %42 : vector<8x128xf32> to vector<8x128xbf16>
    %cst_15 = arith.constant dense<0.000000e+00> : vector<8x128xf32>
    %45 = tpu.matmul %44, %6, %cst_15 {dimension_numbers = #tpu.dot_dimension_numbers<[1], [0], [0], [1], [0, 0, 1, 1], [], []>} : vector<8x128xbf16>, vector<128x128xbf16>, vector<8x128xf32> -> vector<8x128xf32>
    %46 = arith.addf %43, %45 : vector<8x128xf32>
    %47 = math.tanh %46 : vector<8x128xf32>
    %48 = arith.truncf %47 : vector<8x128xf32> to vector<8x128xbf16>
    %c0_16 = arith.constant 0 : index
    %c0_17 = arith.constant 0 : index
    %49 = vector.load %arg4[%c0_16, %c0_17] : memref<128x128xbf16, #tpu.memory_space<vmem>>, vector<128x128xbf16>
    %cst_18 = arith.constant dense<0.000000e+00> : vector<8x128xf32>
    %50 = tpu.matmul %48, %49, %cst_18 {dimension_numbers = #tpu.dot_dimension_numbers<[1], [0], [0], [1], [0, 0, 1, 1], [], []>} : vector<8x128xbf16>, vector<128x128xbf16>, vector<8x128xf32> -> vector<8x128xf32>
    %c0_19 = arith.constant 0 : index
    %c0_20 = arith.constant 0 : index
    %51 = vector.load %arg5[%c0_19, %c0_20] : memref<1x128xf32, #tpu.memory_space<vmem>>, vector<1x128xf32>
    %52 = vector.broadcast %51 : vector<1x128xf32> to vector<8x128xf32>
    %53 = arith.addf %50, %52 : vector<8x128xf32>
    %54 = arith.negf %53 : vector<8x128xf32>
    %55 = math.exp %54 : vector<8x128xf32>
    %cst_21 = arith.constant 1.000000e+00 : f32
    %56 = vector.broadcast %cst_21 : f32 to vector<8x128xf32>
    %57 = arith.addf %56, %55 : vector<8x128xf32>
    %58 = arith.divf %56, %57 : vector<8x128xf32>
    %c0_22 = arith.constant 0 : index
    %c0_23 = arith.constant 0 : index
    %59 = vector.load %arg6[%c0_22, %c0_23] : memref<8x128xf32, #tpu.memory_space<vmem>>, vector<8x128xf32>
    tpu.vector_store %arg6[%c0_22, %c0_23], %58 {strides = array<i32>} : memref<8x128xf32, #tpu.memory_space<vmem>>, vector<8x128xf32>,
    return
  }
}

</mosaic_0001>

<bundles_post_ra>
// kernel: tpu_custom_call.1
= control target key start
LH: loop header
LB: loop body
LE: loop exit
PB: predicated region body
PF: predicated region fallthrough
CT: control target
= control target key end

     0   :  { %11 = vsyncpa [#allocation3], 0  ;;  %s1555_s0 = inlined_call_operand.hbm [shape: bf16[64,128], index: 0, kind: input, shape index: {}]   ;;  %s1556_s1 = inlined_call_operand.hbm [shape: bf16[128,128], index: 1, kind: input, shape index: {}]   ;;  %s1557_s2 = inlined_call_operand.hbm [shape: bf16[128,128], index: 2, kind: input, shape index: {}]   ;;  %s1558_s3 = inlined_call_operand.vmem [shape: f32[1,128], index: 3, kind: input, shape index: {}]   ;;  %s1559_s4 = inlined_call_operand.hbm [shape: bf16[128,128], index: 4, kind: input, shape index: {}]   ;;  %s1560_s5 = inlined_call_operand.vmem [shape: f32[1,128], index: 5, kind: input, shape index: {}]   ;;  %s1561_s6 = inlined_call_operand.hbm [shape: f32[8,128], index: 6, kind: output, shape index: {}]  }
   0x1   :  { %12 = vsyncpa [#allocation6], 0 }
   0x2   :  { %13 = vsyncpa [#allocation9], 0 }
   0x3   :  { %14 = vsyncpa [#allocation4], 0  ;;  %s1285_s21 = smov [#allocation5]   ;;  %s1286_s23 = smov [#allocation2]  }
   0x4   :  { %s32_s22 = sshll.u32 %s1285_s21, 4  ;;  %s20_s24 = sshll.u32 %s1286_s23, 4  ;;  %s33_s22 = int_to_ptr.vmem [resolvable:$true] %s32_s22  ;;  %s21_s24 = int_to_ptr.vmem [resolvable:$true] %s20_s24 }
   0x5   :  { %s1185_s25 = scalar_lea.vmem %s33_s22, 1024  ;;  %p1190_p1 = scmp.lt.s32.totalorder %s33_s22, %s33_s22 }
   0x6   :  { %p1186_p0 = scmp.ne.s32.totalorder %s33_s22, %s1185_s25  ;;  %p1191_p2 = scmp.lt.s32.totalorder %s1185_s25, %s1185_s25 }
   0x8   :  { %p1192_p3 = por %p1191_p2, %p1190_p1 }
   0xa   :  { %p1193_p4 = pnand %p1192_p3, %p1186_p0 }
   0xc   :  { %1196 = shalt.err (!%p1193_p4)
}
   0xd   :  { %s1287_s26 = smov 64   ;;  %s1288_s27 = smov 4  }
   0xe   :  { %38 = dma.hbm_to_vmem [thread:$0]  %s1556_s1, 1024, %s33_s22, [#allocation6], %s1287_s26, %s1287_s26, %s1288_s27  }
   0xf   :  { %s1205_s30 = scalar_lea.vmem %s21_s24, 512  ;;  %p1210_p6 = scmp.lt.s32.totalorder %s21_s24, %s21_s24 }
  0x10   :  { %p1206_p5 = scmp.ne.s32.totalorder %s21_s24, %s1205_s30  ;;  %p1211_p7 = scmp.lt.s32.totalorder %s1205_s30, %s1205_s30 }
  0x12   :  { %p1212_p8 = por %p1211_p7, %p1210_p6 }
  0x14   :  { %p1213_p9 = pnand %p1212_p8, %p1206_p5 }
  0x16   :  { %1216 = shalt.err (!%p1213_p9)
}
  0x17   :  { %26 = dma.hbm_to_vmem [thread:$0]  %s1555_s0, 512, %s21_s24, [#allocation3], %s1287_s26, %s1287_s26, %s1288_s27  }
  0x18   :  { %s1289_s9 = smov [#allocation7]   ;;  %s1290_s11 = smov [#allocation8]  }
  0x19   :  { %s44_s10 = sshll.u32 %s1289_s9, 4  ;;  %s58_s12 = sshll.u32 %s1290_s11, 4  ;;  %s45_s10 = int_to_ptr.vmem [resolvable:$true] %s44_s10  ;;  %s59_s12 = int_to_ptr.vmem [resolvable:$true] %s58_s12 }
  0x1a   :  { %s1225_s1 = scalar_lea.vmem %s45_s10, 1024  ;;  %p1230_p11 = scmp.lt.s32.totalorder %s45_s10, %s45_s10 }
  0x1b   :  { %p1226_p10 = scmp.ne.s32.totalorder %s45_s10, %s1225_s1  ;;  %p1231_p12 = scmp.lt.s32.totalorder %s1225_s1, %s1225_s1 }
  0x1d   :  { %p1232_p13 = por %p1231_p12, %p1230_p11 }
  0x1f   :  { %p1233_p0 = pnand %p1232_p13, %p1226_p10 }
  0x21   :  { %1236 = shalt.err (!%p1233_p0)
}
  0x22   :  { %50 = dma.hbm_to_vmem [thread:$0]  %s1557_s2, 1024, %s45_s10, [#allocation6], %s1287_s26, %s1287_s26, %s1288_s27  }
  0x23   :  { %s1245_s0 = scalar_lea.vmem %s59_s12, 1024  ;;  %p1250_p2 = scmp.lt.s32.totalorder %s59_s12, %s59_s12 }
  0x24   :  { %p1246_p1 = scmp.ne.s32.totalorder %s59_s12, %s1245_s0  ;;  %p1251_p3 = scmp.lt.s32.totalorder %s1245_s0, %s1245_s0 }
  0x26   :  { %p1252_p4 = por %p1251_p3, %p1250_p2 }
  0x28   :  { %p1253_p5 = pnand %p1252_p4, %p1246_p1 }
  0x2a   :  { %1256 = shalt.err (!%p1253_p5)
}
  0x2b   :  { %64 = dma.hbm_to_vmem [thread:$0]  %s1559_s4, 1024, %s59_s12, [#allocation9], %s1287_s26, %s1287_s26, %s1288_s27  }
  0x2c   :  { %1277 = dma.done.wait [#allocation3], 512  }
  0x2d   :  { %1278 = vsyncadd [#allocation3], 4294966784 }
  0x2e   :  { %1279 = dma.done.wait [#allocation6], 2048  }
  0x2f   :  { %1280 = vsyncadd [#allocation6], 4294965248 }
  0x30   :  { %1281 = dma.done.wait [#allocation9], 1024  }
  0x31   :  { %1282 = vsyncadd [#allocation9], 4294966272  ;;  %v1291_v0 = vmov 0.0   ;;  %vm1292_vm0 = vmmov 0   ;;  %v1129_v1 = vld [vmem:[#allocation5 + $0x38] sm:$0xff]   ;;  %v1131_v3 = vld [vmem:[#allocation5 + $0x30] sm:$0xff]  }
  0x32   :  { %939 = vmatprep.subr.bf16.mxu1 %v1291_v0  ;;  %955 = vmatprep.mubr.msk.bf16.mxu1 %vm1292_vm0, %v1291_v0  ;;  %v1357_v2 = vld [vmem:[#allocation7 + $0x38] sm:$0xff]   ;;  %v1360_v4 = vld [vmem:[#allocation7 + $0x30] sm:$0xff]   ;;  %v1133_v5 = vld [vmem:[#allocation5 + $0x28] sm:$0xff]   ;;  %v1293_v19 = vmov 0   ;;  %s1294_s18 = smov [#allocation10]  }
  0x33   :  { %915 = vmatprep.subr.bf16.mxu0 %v1129_v1  ;;  %940 = vmatpush3.bf16.msra.mxu1 %v1357_v2  ;;  %v1364_v6 = vld [vmem:[#allocation7 + $0x28] sm:$0xff]   ;;  %v1135_v7 = vld [vmem:[#allocation5 + $0x20] sm:$0xff]   ;;  %v1137_v9 = vld [vmem:[#allocation5 + $0x18] sm:$0xff]   ;;  %s780_s19 = sshll.u32 %s1294_s18, 4  ;;  %s781_s19 = int_to_ptr.vmem [resolvable:$true] %s780_s19 }
  0x34   :  { %916 = vmatpush3.bf16.msra.mxu0 %v1129_v1  ;;  %941 = vmatprep.subr.bf16.mxu1 %v1291_v0  ;;  %v1368_v8 = vld [vmem:[#allocation7 + $0x20] sm:$0xff]   ;;  %v1371_v10 = vld [vmem:[#allocation7 + $0x18] sm:$0xff]   ;;  %v1139_v11 = vld [vmem:[#allocation5 + $0x10] sm:$0xff]   ;;  %s1257_s20 = scalar_lea.vmem %s781_s19, 128  ;;  %p1262_p7 = scmp.lt.s32.totalorder %s781_s19, %s781_s19 }
  0x35   :  { %917 = vmatprep.subr.bf16.mxu0 %v1131_v3  ;;  %v1145_v12 = vld [vmem:[#allocation2] sm:$0xff]   ;;  %v1375_v13 = vld [vmem:[#allocation7 + $0x10] sm:$0xff]   ;;  %v1141_v14 = vld [vmem:[#allocation5 + $0x8] sm:$0xff]   ;;  %p1258_p6 = scmp.ne.s32.totalorder %s781_s19, %s1257_s20  ;;  %p1263_p8 = scmp.lt.s32.totalorder %s1257_s20, %s1257_s20 }
  0x36   :  { %931 = vmatprep.mubr.bf16.mxu0 %v1145_v12  ;;  %v1379_v15 = vld [vmem:[#allocation7 + $0x8] sm:$0xff]   ;;  %v1143_v16 = vld [vmem:[#allocation5] sm:$0xff]   ;;  %v1147_v20 = vld [vmem:[#allocation2 + $0x10] sm:$0xff]  }
  0x37   :  { %942 = vmatpush3.bf16.msra.mxu1 %v1360_v4  ;;  %v1384_v17 = vld [vmem:[#allocation7] sm:$0xff]   ;;  %v1146_v18 = vld [vmem:[#allocation2 + $0x8] sm:$0xff]   ;;  %v1148_v21 = vld [vmem:[#allocation2 + $0x18] sm:$0xff]   ;;  %p1264_p9 = por %p1263_p8, %p1262_p7 }
  0x38   :  { %918 = vmatpush3.bf16.msra.mxu0 %v1131_v3  ;;  %943 = vmatprep.subr.bf16.mxu1 %v1291_v0  ;;  %v1429_v24 = vld [vmem:[%s1558_s3] ss:$0 sm:$0xff] }
  0x39   :  { %919 = vmatprep.subr.bf16.mxu0 %v1133_v5  ;;  %p1265_p10 = pnand %p1264_p9, %p1258_p6 }
  0x3b   :  { %944 = vmatpush3.bf16.msra.mxu1 %v1364_v6 }
  0x3c   :  { %920 = vmatpush3.bf16.msra.mxu0 %v1133_v5  ;;  %945 = vmatprep.subr.bf16.mxu1 %v1291_v0 }
  0x3d   :  { %921 = vmatprep.subr.bf16.mxu0 %v1135_v7 }
  0x3f   :  { %946 = vmatpush3.bf16.msra.mxu1 %v1368_v8 }
  0x40   :  { %922 = vmatpush3.bf16.msra.mxu0 %v1135_v7  ;;  %947 = vmatprep.subr.bf16.mxu1 %v1291_v0 }
  0x41   :  { %923 = vmatprep.subr.bf16.mxu0 %v1137_v9 }
  0x43   :  { %948 = vmatpush3.bf16.msra.mxu1 %v1371_v10 }
  0x44   :  { %924 = vmatpush3.bf16.msra.mxu0 %v1137_v9  ;;  %949 = vmatprep.subr.bf16.mxu1 %v1291_v0 }
  0x45   :  { %925 = vmatprep.subr.bf16.mxu0 %v1139_v11 }
  0x47   :  { %950 = vmatpush3.bf16.msra.mxu1 %v1375_v13 }
  0x48   :  { %926 = vmatpush3.bf16.msra.mxu0 %v1139_v11  ;;  %951 = vmatprep.subr.bf16.mxu1 %v1291_v0 }
  0x49   :  { %927 = vmatprep.subr.bf16.mxu0 %v1141_v14 }
  0x4b   :  { %952 = vmatpush3.bf16.msra.mxu1 %v1379_v15 }
  0x4c   :  { %928 = vmatpush3.bf16.msra.mxu0 %v1141_v14  ;;  %953 = vmatprep.subr.bf16.mxu1 %v1291_v0 }
  0x4d   :  { %929 = vmatprep.subr.bf16.mxu0 %v1143_v16 }
  0x4f   :  { %954 = vmatpush3.bf16.msra.mxu1 %v1384_v17 }
  0x50   :  { %930 = vmatpush3.bf16.msra.mxu0 %v1143_v16  ;;  %979 = vmatprep.subr.bf16.mxu1 %v1291_v0 }
  0x51   :  { %959 = vmatprep.subr.bf16.mxu0 %v1291_v0 }
  0x52   :  { %956 = vmatmul.mubr.bf16.vlgmr.msra.gmra.mxu1 %v1293_v19 }
  0x53   :  { %932 = vmatmul.mubr.bf16.vlgmr.msra.gmra.mxu0 %v1146_v18  ;;  %980 = vmatpush3.bf16.msra.mxu1 %v1357_v2 }
  0x54   :  { %960 = vmatpush3.bf16.msra.mxu0 %v1357_v2  ;;  %981 = vmatprep.subr.bf16.mxu1 %v1291_v0 }
  0x55   :  { %961 = vmatprep.subr.bf16.mxu0 %v1291_v0  ;;  %995 = vmatprep.mubr.msk.bf16.mxu1 %vm1292_vm0, %v1291_v0 }
  0x56   :  { %935 = vmatprep.mubr.bf16.mxu0 %v1147_v20 }
  0x57   :  { %982 = vmatpush3.bf16.msra.mxu1 %v1360_v4 }
  0x58   :  { %962 = vmatpush3.bf16.msra.mxu0 %v1360_v4  ;;  %983 = vmatprep.subr.bf16.mxu1 %v1291_v0 }
  0x59   :  { %963 = vmatprep.subr.bf16.mxu0 %v1291_v0 }
  0x5b   :  { %984 = vmatpush3.bf16.msra.mxu1 %v1364_v6  ;;  %936 = vmatmul.mubr.bf16.gmra.mxu0 %v1148_v21 }
  0x5c   :  { %964 = vmatpush3.bf16.msra.mxu0 %v1364_v6  ;;  %985 = vmatprep.subr.bf16.mxu1 %v1291_v0 }
  0x5d   :  { %965 = vmatprep.subr.bf16.mxu0 %v1291_v0  ;;  %975 = vmatprep.mubr.msk.bf16.mxu0 %vm1292_vm0, %v1291_v0 }
  0x5f   :  { %986 = vmatpush3.bf16.msra.mxu1 %v1368_v8 }
  0x60   :  { %966 = vmatpush3.bf16.msra.mxu0 %v1368_v8  ;;  %987 = vmatprep.subr.bf16.mxu1 %v1291_v0 }
  0x61   :  { %967 = vmatprep.subr.bf16.mxu0 %v1291_v0 }
  0x63   :  { %988 = vmatpush3.bf16.msra.mxu1 %v1371_v10 }
  0x64   :  { %968 = vmatpush3.bf16.msra.mxu0 %v1371_v10  ;;  %989 = vmatprep.subr.bf16.mxu1 %v1291_v0 }
  0x65   :  { %969 = vmatprep.subr.bf16.mxu0 %v1291_v0 }
  0x67   :  { %990 = vmatpush3.bf16.msra.mxu1 %v1375_v13 }
  0x68   :  { %970 = vmatpush3.bf16.msra.mxu0 %v1375_v13  ;;  %991 = vmatprep.subr.bf16.mxu1 %v1291_v0 }
  0x69   :  { %971 = vmatprep.subr.bf16.mxu0 %v1291_v0 }
  0x6b   :  { %992 = vmatpush3.bf16.msra.mxu1 %v1379_v15 }
  0x6c   :  { %972 = vmatpush3.bf16.msra.mxu0 %v1379_v15  ;;  %993 = vmatprep.subr.bf16.mxu1 %v1291_v0 }
  0x6d   :  { %973 = vmatprep.subr.bf16.mxu0 %v1291_v0 }
  0x6f   :  { %994 = vmatpush3.bf16.msra.mxu1 %v1384_v17 }
  0x70   :  { %974 = vmatpush3.bf16.msra.mxu0 %v1384_v17  ;;  %1019 = vmatprep.subr.bf16.mxu1 %v1291_v0 }
  0x71   :  { %999 = vmatprep.subr.bf16.mxu0 %v1291_v0 }
 0x112   :  { %v346_v22 = vpop.f32.mrf.mxu1 }
 0x113   :  { %v933_v23 = vpop.f32.mrf.mxu0 }
 0x114   :  { %v957_v25 = vpop.f32.mrf.mxu1  ;;  %v226_v47 = vadd.f32 %v933_v23, %v1429_v24 }
 0x115   :  { %v217_v26 = vpop.f32.mrf.mxu0 }
 0x116   :  { %v218_v27 = vadd.f32 %v1429_v24, %v217_v26  ;;  %v349_v28 = vpop.f32.mrf.mxu1 }
 0x117   :  { %v934_v33 = vpop.f32.mrf.mxu0  ;;  %v1152_v28 = vld [vmem:[#allocation8 + $0x20] sm:$0xff]  }
 0x118   :  { %v352_v29 = vadd.f32 %v346_v22, %v218_v27  ;;  %v958_v30 = vpop.f32.mrf.mxu1  ;;  %v229_v55 = vadd.f32 %v934_v33, %v1429_v24 }
 0x119   :  { %v220_v34 = vpop.f32.mrf.mxu0  ;;  %v1154_v30 = vld [vmem:[#allocation8 + $0x10] sm:$0xff]  }
 0x11a   :  { %1157 = vtanh.f32 %v352_v29  ;;  %v221_v39 = vadd.f32 %v1429_v24, %v220_v34  ;;  %v1153_v29 = vld [vmem:[#allocation8 + $0x18] sm:$0xff]  }
 0x11b   :  { %v1450_v35 = vpop.f32.mrf.mxu0 }
 0x11c   :  { %v242_v19 = vadd.f32 %v1450_v35, %v1429_v24 }
 0x11d   :  { %v1452_v36 = vpop.f32.mrf.mxu0 }
 0x11e   :  { %v234_v63 = vadd.f32 %v1429_v24, %v1452_v36 }
 0x11f   :  { %v1454_v37 = vpop.f32.mrf.mxu0 }
 0x120   :  { %v245_v33 = vadd.f32 %v1454_v37, %v1429_v24 }
 0x121   :  { %v1456_v38 = vpop.f32.mrf.mxu0 }
 0x127   :  { %v1158_v31 = vpop.eup %1157 }
 0x128   :  { %v354_v32 = vpack.c.bf16 %v1158_v31, %v1158_v31  ;;  %v1155_v31 = vld [vmem:[#allocation8 + $0x8] sm:$0xff]  }
 0x12a   :  { %976 = vmatmul.mubr.bf16.vlgmr.msra.gmra.mxu0 %v354_v32  ;;  %v1156_v32 = vld [vmem:[#allocation8] sm:$0xff]  }
 0x12b   :  { %1000 = vmatpush3.bf16.msra.mxu0 %v1357_v2  ;;  %1015 = vmatprep.mubr.msk.bf16.mxu0 %vm1292_vm0, %v1291_v0 }
 0x12c   :  { %1001 = vmatprep.subr.bf16.mxu0 %v1291_v0 }
 0x12f   :  { %1002 = vmatpush3.bf16.msra.mxu0 %v1360_v4 }
 0x130   :  { %1003 = vmatprep.subr.bf16.mxu0 %v1291_v0 }
 0x133   :  { %1004 = vmatpush3.bf16.msra.mxu0 %v1364_v6 }
 0x134   :  { %1005 = vmatprep.subr.bf16.mxu0 %v1291_v0 }
 0x137   :  { %1006 = vmatpush3.bf16.msra.mxu0 %v1368_v8 }
 0x138   :  { %1007 = vmatprep.subr.bf16.mxu0 %v1291_v0 }
 0x13b   :  { %1008 = vmatpush3.bf16.msra.mxu0 %v1371_v10 }
 0x13c   :  { %1009 = vmatprep.subr.bf16.mxu0 %v1291_v0 }
 0x13f   :  { %1010 = vmatpush3.bf16.msra.mxu0 %v1375_v13 }
 0x140   :  { %1011 = vmatprep.subr.bf16.mxu0 %v1291_v0 }
 0x143   :  { %1012 = vmatpush3.bf16.msra.mxu0 %v1379_v15 }
 0x144   :  { %1013 = vmatprep.subr.bf16.mxu0 %v1291_v0 }
 0x147   :  { %1014 = vmatpush3.bf16.msra.mxu0 %v1384_v17 }
 0x148   :  { %1039 = vmatprep.subr.bf16.mxu0 %v1291_v0 }
 0x1ea   :  { %v389_v40 = vpop.f32.mrf.mxu0 }
 0x1eb   :  { %v395_v41 = vadd.f32 %v389_v40, %v221_v39 }
 0x1ec   :  { %v977_v42 = vpop.f32.mrf.mxu0 }
 0x1ed   :  { %1159 = vtanh.f32 %v395_v41  ;;  %v812_v42 = vld [vmem:[%s1560_s5] ss:$0 sm:$0xff] }
 0x1ee   :  { %v392_v43 = vpop.f32.mrf.mxu0 }
 0x1f0   :  { %v978_v44 = vpop.f32.mrf.mxu0 }
 0x1fa   :  { %v1160_v45 = vpop.eup %1159 }
 0x1fb   :  { %v397_v46 = vpack.c.bf16 %v1160_v45, %v1160_v45 }
 0x1fd   :  { %996 = vmatmul.mubr.bf16.vlgmr.msra.gmra.mxu1 %v397_v46 }
 0x1fe   :  { %1020 = vmatpush3.bf16.msra.mxu1 %v1357_v2  ;;  %1035 = vmatprep.mubr.msk.bf16.mxu1 %vm1292_vm0, %v1291_v0 }
 0x1ff   :  { %1021 = vmatprep.subr.bf16.mxu1 %v1291_v0 }
 0x202   :  { %1022 = vmatpush3.bf16.msra.mxu1 %v1360_v4 }
 0x203   :  { %1023 = vmatprep.subr.bf16.mxu1 %v1291_v0 }
 0x206   :  { %1024 = vmatpush3.bf16.msra.mxu1 %v1364_v6 }
 0x207   :  { %1025 = vmatprep.subr.bf16.mxu1 %v1291_v0 }
 0x20a   :  { %1026 = vmatpush3.bf16.msra.mxu1 %v1368_v8 }
 0x20b   :  { %1027 = vmatprep.subr.bf16.mxu1 %v1291_v0 }
 0x20e   :  { %1028 = vmatpush3.bf16.msra.mxu1 %v1371_v10 }
 0x20f   :  { %1029 = vmatprep.subr.bf16.mxu1 %v1291_v0 }
 0x212   :  { %1030 = vmatpush3.bf16.msra.mxu1 %v1375_v13 }
 0x213   :  { %1031 = vmatprep.subr.bf16.mxu1 %v1291_v0 }
 0x216   :  { %1032 = vmatpush3.bf16.msra.mxu1 %v1379_v15 }
 0x217   :  { %1033 = vmatprep.subr.bf16.mxu1 %v1291_v0 }
 0x21a   :  { %1034 = vmatpush3.bf16.msra.mxu1 %v1384_v17 }
 0x21b   :  { %1059 = vmatprep.subr.bf16.mxu1 %v1291_v0 }
 0x2bd   :  { %v432_v48 = vpop.f32.mrf.mxu1 }
 0x2be   :  { %v438_v49 = vadd.f32 %v432_v48, %v226_v47 }
 0x2bf   :  { %v997_v50 = vpop.f32.mrf.mxu1 }
 0x2c0   :  { %1161 = vtanh.f32 %v438_v49 }
 0x2c1   :  { %v435_v51 = vpop.f32.mrf.mxu1 }
 0x2c3   :  { %v998_v52 = vpop.f32.mrf.mxu1 }
 0x2cd   :  { %v1162_v53 = vpop.eup %1161 }
 0x2ce   :  { %v440_v54 = vpack.c.bf16 %v1162_v53, %v1162_v53 }
 0x2d0   :  { %1016 = vmatmul.mubr.bf16.vlgmr.msra.gmra.mxu0 %v440_v54 }
 0x2d1   :  { %1040 = vmatpush3.bf16.msra.mxu0 %v1357_v2  ;;  %1055 = vmatprep.mubr.msk.bf16.mxu0 %vm1292_vm0, %v1291_v0 }
 0x2d2   :  { %1041 = vmatprep.subr.bf16.mxu0 %v1291_v0 }
 0x2d5   :  { %1042 = vmatpush3.bf16.msra.mxu0 %v1360_v4 }
 0x2d6   :  { %1043 = vmatprep.subr.bf16.mxu0 %v1291_v0 }
 0x2d9   :  { %1044 = vmatpush3.bf16.msra.mxu0 %v1364_v6 }
 0x2da   :  { %1045 = vmatprep.subr.bf16.mxu0 %v1291_v0 }
 0x2dd   :  { %1046 = vmatpush3.bf16.msra.mxu0 %v1368_v8 }
 0x2de   :  { %1047 = vmatprep.subr.bf16.mxu0 %v1291_v0 }
 0x2e1   :  { %1048 = vmatpush3.bf16.msra.mxu0 %v1371_v10 }
 0x2e2   :  { %1049 = vmatprep.subr.bf16.mxu0 %v1291_v0 }
 0x2e5   :  { %1050 = vmatpush3.bf16.msra.mxu0 %v1375_v13 }
 0x2e6   :  { %1051 = vmatprep.subr.bf16.mxu0 %v1291_v0 }
 0x2e9   :  { %1052 = vmatpush3.bf16.msra.mxu0 %v1379_v15 }
 0x2ea   :  { %1053 = vmatprep.subr.bf16.mxu0 %v1291_v0 }
 0x2ed   :  { %1054 = vmatpush3.bf16.msra.mxu0 %v1384_v17 }
 0x2ee   :  { %1079 = vmatprep.subr.bf16.mxu0 %v1291_v0 }
 0x390   :  { %v475_v56 = vpop.f32.mrf.mxu0 }
 0x391   :  { %v481_v57 = vadd.f32 %v475_v56, %v229_v55 }
 0x392   :  { %v1017_v58 = vpop.f32.mrf.mxu0 }
 0x393   :  { %1163 = vtanh.f32 %v481_v57 }
 0x394   :  { %v478_v59 = vpop.f32.mrf.mxu0 }
 0x396   :  { %v1018_v60 = vpop.f32.mrf.mxu0 }
 0x3a0   :  { %v1164_v61 = vpop.eup %1163 }
 0x3a1   :  { %v483_v62 = vpack.c.bf16 %v1164_v61, %v1164_v61 }
 0x3a3   :  { %1036 = vmatmul.mubr.bf16.vlgmr.msra.gmra.mxu1 %v483_v62 }
 0x3a4   :  { %1060 = vmatpush3.bf16.msra.mxu1 %v1357_v2  ;;  %1075 = vmatprep.mubr.msk.bf16.mxu1 %vm1292_vm0, %v1291_v0 }
 0x3a5   :  { %1061 = vmatprep.subr.bf16.mxu1 %v1291_v0 }
 0x3a8   :  { %1062 = vmatpush3.bf16.msra.mxu1 %v1360_v4 }
 0x3a9   :  { %1063 = vmatprep.subr.bf16.mxu1 %v1291_v0 }
 0x3ac   :  { %1064 = vmatpush3.bf16.msra.mxu1 %v1364_v6 }
 0x3ad   :  { %1065 = vmatprep.subr.bf16.mxu1 %v1291_v0 }
 0x3b0   :  { %1066 = vmatpush3.bf16.msra.mxu1 %v1368_v8 }
 0x3b1   :  { %1067 = vmatprep.subr.bf16.mxu1 %v1291_v0 }
 0x3b4   :  { %1068 = vmatpush3.bf16.msra.mxu1 %v1371_v10 }
 0x3b5   :  { %1069 = vmatprep.subr.bf16.mxu1 %v1291_v0 }
 0x3b8   :  { %1070 = vmatpush3.bf16.msra.mxu1 %v1375_v13 }
 0x3b9   :  { %1071 = vmatprep.subr.bf16.mxu1 %v1291_v0 }
 0x3bc   :  { %1072 = vmatpush3.bf16.msra.mxu1 %v1379_v15 }
 0x3bd   :  { %1073 = vmatprep.subr.bf16.mxu1 %v1291_v0 }
 0x3c0   :  { %1074 = vmatpush3.bf16.msra.mxu1 %v1384_v17 }
 0x3c1   :  { %1099 = vmatprep.subr.bf16.mxu1 %v1291_v0 }
 0x463   :  { %v518_v1 = vpop.f32.mrf.mxu1 }
 0x464   :  { %v524_v3 = vadd.f32 %v518_v1, %v234_v63 }
 0x465   :  { %v1037_v5 = vpop.f32.mrf.mxu1 }
 0x466   :  { %1165 = vtanh.f32 %v524_v3 }
 0x467   :  { %v521_v7 = vpop.f32.mrf.mxu1 }
 0x469   :  { %v1038_v9 = vpop.f32.mrf.mxu1 }
 0x473   :  { %v1166_v11 = vpop.eup %1165 }
 0x474   :  { %v526_v12 = vpack.c.bf16 %v1166_v11, %v1166_v11 }
 0x476   :  { %1056 = vmatmul.mubr.bf16.vlgmr.msra.gmra.mxu0 %v526_v12 }
 0x477   :  { %1080 = vmatpush3.bf16.msra.mxu0 %v1357_v2  ;;  %1095 = vmatprep.mubr.msk.bf16.mxu0 %vm1292_vm0, %v1291_v0  ;;  %v237_v2 = vadd.f32 %v1429_v24, %v1456_v38 }
 0x478   :  { %1081 = vmatprep.subr.bf16.mxu0 %v1291_v0 }
 0x47b   :  { %1082 = vmatpush3.bf16.msra.mxu0 %v1360_v4 }
 0x47c   :  { %1083 = vmatprep.subr.bf16.mxu0 %v1291_v0 }
 0x47f   :  { %1084 = vmatpush3.bf16.msra.mxu0 %v1364_v6 }
 0x480   :  { %1085 = vmatprep.subr.bf16.mxu0 %v1291_v0 }
 0x483   :  { %1086 = vmatpush3.bf16.msra.mxu0 %v1368_v8 }
 0x484   :  { %1087 = vmatprep.subr.bf16.mxu0 %v1291_v0 }
 0x487   :  { %1088 = vmatpush3.bf16.msra.mxu0 %v1371_v10 }
 0x488   :  { %1089 = vmatprep.subr.bf16.mxu0 %v1291_v0 }
 0x48b   :  { %1090 = vmatpush3.bf16.msra.mxu0 %v1375_v13  ;;  %v1149_v13 = vld [vmem:[#allocation8 + $0x38] sm:$0xff]  }
 0x48c   :  { %1091 = vmatprep.subr.bf16.mxu0 %v1291_v0 }
 0x48f   :  { %1092 = vmatpush3.bf16.msra.mxu0 %v1379_v15  ;;  %v1150_v15 = vld [vmem:[#allocation8 + $0x30] sm:$0xff]  }
 0x490   :  { %1093 = vmatprep.subr.bf16.mxu0 %v1291_v0 }
 0x493   :  { %1094 = vmatpush3.bf16.msra.mxu0 %v1384_v17  ;;  %v1151_v17 = vld [vmem:[#allocation8 + $0x28] sm:$0xff]  }
 0x536   :  { %v561_v4 = vpop.f32.mrf.mxu0 }
 0x537   :  { %v567_v6 = vadd.f32 %v561_v4, %v237_v2 }
 0x538   :  { %v1057_v8 = vpop.f32.mrf.mxu0 }
 0x539   :  { %1167 = vtanh.f32 %v567_v6 }
 0x53a   :  { %v564_v10 = vpop.f32.mrf.mxu0 }
 0x53c   :  { %v1058_v14 = vpop.f32.mrf.mxu0 }
 0x546   :  { %v1168_v16 = vpop.eup %1167 }
 0x547   :  { %v569_v18 = vpack.c.bf16 %v1168_v16, %v1168_v16 }
 0x549   :  { %1076 = vmatmul.mubr.bf16.vlgmr.msra.gmra.mxu1 %v569_v18 }
 0x54a   :  { %1115 = vmatprep.mubr.msk.bf16.mxu1 %vm1292_vm0, %v1291_v0  ;;  %1100 = vmatpush3.bf16.msra.mxu1 %v1149_v13 }
 0x54b   :  { %1101 = vmatprep.subr.bf16.mxu1 %v1291_v0 }
 0x54e   :  { %1102 = vmatpush3.bf16.msra.mxu1 %v1150_v15 }
 0x54f   :  { %1103 = vmatprep.subr.bf16.mxu1 %v1291_v0 }
 0x552   :  { %1104 = vmatpush3.bf16.msra.mxu1 %v1151_v17 }
 0x553   :  { %1105 = vmatprep.subr.bf16.mxu1 %v1291_v0 }
 0x556   :  { %1106 = vmatpush3.bf16.msra.mxu1 %v1152_v28 }
 0x557   :  { %1107 = vmatprep.subr.bf16.mxu1 %v1291_v0 }
 0x55a   :  { %1108 = vmatpush3.bf16.msra.mxu1 %v1153_v29 }
 0x55b   :  { %1109 = vmatprep.subr.bf16.mxu1 %v1291_v0 }
 0x55e   :  { %1110 = vmatpush3.bf16.msra.mxu1 %v1154_v30 }
 0x55f   :  { %1111 = vmatprep.subr.bf16.mxu1 %v1291_v0 }
 0x562   :  { %1112 = vmatpush3.bf16.msra.mxu1 %v1155_v31 }
 0x563   :  { %1113 = vmatprep.subr.bf16.mxu1 %v1291_v0 }
 0x566   :  { %1114 = vmatpush3.bf16.msra.mxu1 %v1156_v32 }
 0x609   :  { %v604_v20 = vpop.f32.mrf.mxu1 }
 0x60a   :  { %v610_v21 = vadd.f32 %v604_v20, %v242_v19 }
 0x60b   :  { %v1077_v22 = vpop.f32.mrf.mxu1 }
 0x60c   :  { %1169 = vtanh.f32 %v610_v21 }
 0x60d   :  { %v607_v23 = vpop.f32.mrf.mxu1 }
 0x60f   :  { %v1078_v25 = vpop.f32.mrf.mxu1 }
 0x619   :  { %v1170_v26 = vpop.eup %1169 }
 0x61a   :  { %v612_v27 = vpack.c.bf16 %v1170_v26, %v1170_v26 }
 0x61c   :  { %1096 = vmatmul.mubr.bf16.vlgmr.msra.gmra.mxu0 %v612_v27 }
 0x6dc   :  { %v647_v34 = vpop.f32.mrf.mxu0 }
 0x6dd   :  { %v653_v35 = vadd.f32 %v647_v34, %v245_v33 }
 0x6de   :  { %v1097_v36 = vpop.f32.mrf.mxu0 }
 0x6df   :  { %1171 = vtanh.f32 %v653_v35 }
 0x6e0   :  { %v650_v38 = vpop.f32.mrf.mxu0 }
 0x6e2   :  { %v1098_v39 = vpop.f32.mrf.mxu0 }
 0x6ec   :  { %v1172_v40 = vpop.eup %1171 }
 0x6ed   :  { %v655_v41 = vpack.c.bf16 %v1172_v40, %v1172_v40 }
 0x6ef   :  { %1116 = vmatmul.mubr.bf16.vlgmr.msra.gmra.mxu1 %v655_v41 }
 0x7af   :  { %v761_v43 = vpop.f32.mrf.mxu1 }
 0x7b0   :  { %v762_v0 = vadd.f32 %v812_v42, %v761_v43 }
 0x7b1   :  { %v1117_v44 = vpop.f32.mrf.mxu1 }
 0x7b2   :  { %v821_v45 = vmul.f32 -1.442695, %v762_v0 }
 0x7b3   :  { %v764_v46 = vpop.f32.mrf.mxu1 }
 0x7b4   :  { %1173 = vpow2.f32 %v821_v45 }
 0x7b5   :  { %v1118_v24 = vpop.f32.mrf.mxu1 }
 0x7c1   :  { %v1174_v37 = vpop.eup %1173 }
 0x7c2   :  { %v770_v47 = vadd.f32 1.0, %v1174_v37 }
 0x7c4   :  { %1175 = vrcp.f32 %v770_v47 }
 0x7d1   :  { %v1176_v48 = vpop.eup %1175 }
 0x7d2   :  { %773 = vst [vmem:[#allocation10] sm:$0xff] %v1176_v48 }
 0x7d3   :  { %1268 = shalt.err (!%p1265_p10)
}
 0x7d4   :  { %783 = dma.vmem_to_hbm [thread:$0]  %s781_s19, 128, %s1561_s6, [#allocation4]  }
 0x7d5   :  { %1283 = dma.done.wait [#allocation4], 128  }
 0x7d6   :  { %1284 = vsyncadd [#allocation4], 4294967168 }
 0x7d7   :  { %787 = vsyncpa [#allocation3], 1 }
 0x7d8   :  { %788 = vsyncpa [#allocation6], 1 }
 0x7d9   :  { %789 = vsyncpa [#allocation9], 1 }
 0x7da   :  { %790 = vsyncpa [#allocation4], 1 }

</bundles_post_ra>
